<compile_context>
chip_gen: v7x
topology: tpu7x:2x2x1
jax: 0.10.0
libtpu: 0.0.40
codegen_flags: <defaults>
</compile_context>

<pallas_src>
import functools
import math

import jax
import jax.numpy as jnp
from jax import lax
from jax.experimental import pallas as pl
from jax.experimental.pallas import tpu as pltpu

# ----------------------------- model config --------------------------------
DIM         = 32
N_HEADS     = 4
HEAD_DIM    = DIM // N_HEADS
SEQ         = 8
BATCH       = 2
MULTIPLE_OF = 32
NORM_EPS    = 1e-5
DROPOUT     = 0.0   # eval mode -> dropout is identity


def _llama_hidden_dim(dim, multiple_of):
    hidden = 4 * dim
    hidden = int(2 * hidden / 3)
    hidden = multiple_of * ((hidden + multiple_of - 1) // multiple_of)
    return hidden


HIDDEN_DIM = _llama_hidden_dim(DIM, MULTIPLE_OF)   # 96 for DIM=32


# ------------------------------ Pallas kernel -------------------------------
def decoder_layer_kernel(x_ref, rope_ref, nrm_ref, wslab_ref, w2_ref, o_ref, *,
                         batch, seq, n_heads, head_dim, dim, hidden, eps):
    D = dim
    R = batch * seq
    scale = 1.0 / math.sqrt(head_dim)

    x = x_ref[...]                                            # (R, D)

    # ---- attention RMSNorm ----
    xn = x * lax.rsqrt(jnp.mean(x * x, axis=-1, keepdims=True) + eps)
    xn = xn * nrm_ref[0:1, :]

    # ---- fused projections: [q | k | v | q@P | k@P] in ONE matmul ----
    # (pair-swap permutation P is folded into the weights host-side)
    qkvr = jnp.dot(xn, wslab_ref[:, 0:5 * D],
                   preferred_element_type=jnp.float32)        # (R, 5D)
    q    = qkvr[:, 0 * D:1 * D]
    k    = qkvr[:, 1 * D:2 * D]
    v    = qkvr[:, 2 * D:3 * D]
    q_sw = qkvr[:, 3 * D:4 * D]                               # q with adjacent lanes swapped
    k_sw = qkvr[:, 4 * D:5 * D]

    # ---- rotary embedding (pure elementwise) ----
    cos = rope_ref[:, 0:D]                                    # (R, D)
    sin = rope_ref[:, D:2 * D]                                # signed sin table
    q = q * cos + q_sw * sin
    k = k * cos + k_sw * sin

    # ---- causal attention, batch handled inside a batched einsum ----
    row = lax.broadcasted_iota(jnp.int32, (batch, seq, seq), 1)
    col = lax.broadcasted_iota(jnp.int32, (batch, seq, seq), 2)
    causal = row >= col                                       # (B, S, S)

    wo = wslab_ref[:, 5 * D:6 * D]                            # (D, D)
    attn = jnp.zeros((R, D), jnp.float32)
    for h in range(n_heads):                                  # 4 unrolled iterations
        lo, hi = h * head_dim, (h + 1) * head_dim
        qh = q[:, lo:hi].reshape(batch, seq, head_dim)        # leading-dim split only
        kh = k[:, lo:hi].reshape(batch, seq, head_dim)
        vh = v[:, lo:hi].reshape(batch, seq, head_dim)
        sc = jnp.einsum('bqd,bkd->bqk', qh, kh,
                        preferred_element_type=jnp.float32) * scale
        sc = jnp.where(causal, sc, -1e30)
        sc = sc - jnp.max(sc, axis=-1, keepdims=True)
        p = jnp.exp(sc)
        p = p * pl.reciprocal(jnp.sum(p, axis=-1, keepdims=True), approx=True)
        oh = jnp.einsum('bqk,bkd->bqd', p, vh,
                        preferred_element_type=jnp.float32)   # (B, S, hd)
        # accumulate output projection per head -> no lane-axis concatenate
        attn = attn + jnp.dot(oh.reshape(R, head_dim), wo[lo:hi, :],
                              preferred_element_type=jnp.float32)

    h_res = x + attn                                          # residual 1

    # ---- ffn RMSNorm ----
    hn = h_res * lax.rsqrt(jnp.mean(h_res * h_res, axis=-1, keepdims=True) + eps)
    hn = hn * nrm_ref[1:2, :]

    # ---- SwiGLU MLP with fused [w1 | w3] ----
    gu = jnp.dot(hn, wslab_ref[:, 6 * D:6 * D + 2 * hidden],
                 preferred_element_type=jnp.float32)          # (R, 2H)
    g = gu[:, 0:hidden]
    u = gu[:, hidden:2 * hidden]
    mlp = jnp.dot(g * jax.nn.sigmoid(g) * u, w2_ref[...],
                  preferred_element_type=jnp.float32)

    o_ref[...] = h_res + mlp                                  # residual 2


# ------------------------------ wrapper --------------------------------------
def decoder_layer(x, freqs_cos, freqs_sin, params):
    B, S, D = x.shape
    H, hd = N_HEADS, HEAD_DIM
    R = B * S

    # --- host-side glue: rope tables expanded to (R, D) lanes, batch-tiled ---
    cos_head = jnp.repeat(freqs_cos, 2, axis=-1)                       # (S, hd)
    sin_head = jnp.repeat(freqs_sin, 2, axis=-1)                       # (S, hd)
    sign = jnp.tile(jnp.array([-1.0, 1.0], jnp.float32), hd // 2)      # (hd,)
    cos_full = jnp.tile(cos_head, (B, H))                              # (R, D)
    sin_alt = jnp.tile(sin_head * sign, (B, H))                        # (R, D)
    rope = jnp.concatenate([cos_full, sin_alt], axis=-1)               # (R, 2D)

    # --- packed norm weights ---
    norms = jnp.concatenate([params["attn_norm"], params["ffn_norm"]], axis=0)  # (2, D)

    # --- fold the RoPE pair-swap permutation into wq/wk (exact) ---
    swap = jnp.arange(D) ^ 1
    wq_sw = params["wq"][:, swap]
    wk_sw = params["wk"][:, swap]

    # --- single weight slab for all D-row weights: [wq|wk|wv|wqP|wkP|wo|w1|w3] ---
    wslab = jnp.concatenate(
        [params["wq"], params["wk"], params["wv"], wq_sw, wk_sw,
         params["wo"], params["w1"], params["w3"]], axis=1)            # (D, 6D+2*HIDDEN)

    x2 = x.reshape(R, D)                                               # fold batch into rows

    kernel = functools.partial(
        decoder_layer_kernel, batch=B, seq=S, n_heads=H, head_dim=hd,
        dim=D, hidden=HIDDEN_DIM, eps=NORM_EPS)

    full2d = lambda shape: pl.BlockSpec(shape, lambda i: (0, 0))

    out = pl.pallas_call(
        kernel,
        out_shape=jax.ShapeDtypeStruct((R, D), jnp.float32),
        grid=(1,),                                                     # single grid step
        in_specs=[
            full2d((R, D)),                        # x (batch folded)
            full2d((R, 2 * D)),                    # cos || signed-sin
            full2d((2, D)),                        # attn_norm || ffn_norm
            full2d((D, 6 * D + 2 * HIDDEN_DIM)),   # weight slab
            full2d((HIDDEN_DIM, D)),               # w2
        ],
        out_specs=full2d((R, D)),
        compiler_params=pltpu.CompilerParams(dimension_semantics=("arbitrary",)),
    )(x2, rope, norms, wslab, params["w2"])
    return out.reshape(B, S, D)


# --------------------------- pure-JAX reference ------------------------------
def decoder_layer_ref(x, freqs_cos, freqs_sin, p):
    B, S, D = x.shape
    H, hd = N_HEADS, HEAD_DIM

    def rmsnorm(v, w):
        return v * lax.rsqrt(jnp.mean(v * v, -1, keepdims=True) + NORM_EPS) * w

    xn = rmsnorm(x, p["attn_norm"])
    q = (xn @ p["wq"]).reshape(B, S, H, hd)
    k = (xn @ p["wk"]).reshape(B, S, H, hd)
    v = (xn @ p["wv"]).reshape(B, S, H, hd)

    cos = freqs_cos[None, :, None, :]
    sin = freqs_sin[None, :, None, :]
    qr, qi = q[..., ::2], q[..., 1::2]
    kr, ki = k[..., ::2], k[..., 1::2]
    q = jnp.stack([qr * cos - qi * sin, qr * sin + qi * cos], -1).reshape(B, S, H, hd)
    k = jnp.stack([kr * cos - ki * sin, kr * sin + ki * cos], -1).reshape(B, S, H, hd)

    sc = jnp.einsum("bqhd,bkhd->bhqk", q, k) / math.sqrt(hd)
    mask = jnp.tril(jnp.ones((S, S), bool))
    sc = jnp.where(mask[None, None], sc, -1e30)
    pr = jax.nn.softmax(sc, axis=-1)
    attn = jnp.einsum("bhqk,bkhd->bqhd", pr, v).reshape(B, S, D) @ p["wo"]

    h = x + attn
    hn = rmsnorm(h, p["ffn_norm"])
    mlp = (jax.nn.silu(hn @ p["w1"]) * (hn @ p["w3"])) @ p["w2"]
    return h + mlp


# ------------------------------ main ------------------------------------------
if __name__ == "__main__":
    key = jax.random.PRNGKey(0)
    ks = jax.random.split(key, 12)

    x = jax.random.normal(ks[0], (BATCH, SEQ, DIM), jnp.float32)

    # rotary tables (as produced by precompute_freqs_cis)
    inv_freq = 1.0 / (10000.0 ** (jnp.arange(0, HEAD_DIM, 2, dtype=jnp.float32) / HEAD_DIM))
    t = jnp.arange(SEQ, dtype=jnp.float32)
    freqs = jnp.outer(t, inv_freq)                 # (S, hd/2)
    freqs_cos = jnp.cos(freqs)
    freqs_sin = jnp.sin(freqs)

    s = 0.05
    params = {
        "attn_norm": 1.0 + 0.1 * jax.random.normal(ks[1], (1, DIM), jnp.float32),
        "wq": s * jax.random.normal(ks[2], (DIM, DIM), jnp.float32),
        "wk": s * jax.random.normal(ks[3], (DIM, DIM), jnp.float32),
        "wv": s * jax.random.normal(ks[4], (DIM, DIM), jnp.float32),
        "wo": s * jax.random.normal(ks[5], (DIM, DIM), jnp.float32),
        "ffn_norm": 1.0 + 0.1 * jax.random.normal(ks[6], (1, DIM), jnp.float32),
        "w1": s * jax.random.normal(ks[7], (DIM, HIDDEN_DIM), jnp.float32),
        "w3": s * jax.random.normal(ks[8], (DIM, HIDDEN_DIM), jnp.float32),
        "w2": s * jax.random.normal(ks[9], (HIDDEN_DIM, DIM), jnp.float32),
    }

    out = decoder_layer(x, freqs_cos, freqs_sin, params)
    out = jax.block_until_ready(out)

    ref = decoder_layer_ref(x, freqs_cos, freqs_sin, params)
    assert out.shape == (BATCH, SEQ, DIM)
    # tolerance is slightly looser than 1e-4 because softmax normalization uses
    # the approximate EUP reciprocal (pl.reciprocal(approx=True)); any structural
    # bug (RoPE sign, masking, fused-weight slicing) would be orders of magnitude larger.
    assert jnp.allclose(out, ref, atol=1e-3, rtol=1e-3), "mismatch vs reference"

    print("KERNEL_OK")
</pallas_src>

<mosaic_0001>
module attributes {stable_mosaic.version = 11 : i64} {
  func.func @decoder_layer_kernel(%arg0: i32, %arg1: memref<16x32xf32, #tpu.memory_space<vmem>>, %arg2: memref<16x64xf32, #tpu.memory_space<vmem>>, %arg3: memref<2x32xf32, #tpu.memory_space<vmem>>, %arg4: memref<32x384xf32, #tpu.memory_space<vmem>>, %arg5: memref<96x32xf32, #tpu.memory_space<vmem>>, %arg6: memref<16x32xf32, #tpu.memory_space<vmem>>) attributes {dimension_semantics = [#tpu.dimension_semantics<arbitrary>], iteration_bounds = array<i64: 1>, scalar_prefetch = 0 : i64, scratch_operands = 0 : i64, tpu.core_type = #tpu.core_type<tc>, window_params = [{pipeline_mode = #tpu.pipeline_mode<synchronous>, transform_indices = @transform_0, window_bounds = array<i64: 16, 32>}, {pipeline_mode = #tpu.pipeline_mode<synchronous>, transform_indices = @transform_1, window_bounds = array<i64: 16, 64>}, {pipeline_mode = #tpu.pipeline_mode<synchronous>, transform_indices = @transform_2, window_bounds = array<i64: 2, 32>}, {pipeline_mode = #tpu.pipeline_mode<synchronous>, transform_indices = @transform_3, window_bounds = array<i64: 32, 384>}, {pipeline_mode = #tpu.pipeline_mode<synchronous>, transform_indices = @transform_4, window_bounds = array<i64: 96, 32>}, {pipeline_mode = #tpu.pipeline_mode<synchronous>, transform_indices = @transform_5, window_bounds = array<i64: 16, 32>}]} {
    %c0 = arith.constant 0 : index
    %c0_0 = arith.constant 0 : index
    %0 = vector.load %arg1[%c0, %c0_0] : memref<16x32xf32, #tpu.memory_space<vmem>>, vector<16x32xf32>
    %1 = arith.mulf %0, %0 : vector<16x32xf32>
    %cst = arith.constant dense<0.000000e+00> : vector<16xf32>
    %2 = vector.multi_reduction <add>, %1, %cst [1] : vector<16x32xf32> to vector<16xf32>
    %3 = vector.shape_cast %2 : vector<16xf32> to vector<16x1xf32>
    %cst_1 = arith.constant 3.200000e+01 : f32
    %4 = vector.broadcast %cst_1 : f32 to vector<16x1xf32>
    %5 = arith.divf %3, %4 : vector<16x1xf32>
    %cst_2 = arith.constant 9.99999974E-6 : f32
    %6 = vector.broadcast %cst_2 : f32 to vector<16x1xf32>
    %7 = arith.addf %5, %6 : vector<16x1xf32>
    %8 = math.rsqrt %7 : vector<16x1xf32>
    %9 = vector.broadcast %8 : vector<16x1xf32> to vector<16x32xf32>
    %10 = arith.mulf %0, %9 : vector<16x32xf32>
    %c0_3 = arith.constant 0 : index
    %c0_4 = arith.constant 0 : index
    %11 = vector.load %arg3[%c0_3, %c0_4] : memref<2x32xf32, #tpu.memory_space<vmem>>, vector<1x32xf32>
    %12 = vector.broadcast %11 : vector<1x32xf32> to vector<16x32xf32>
    %13 = arith.mulf %10, %12 : vector<16x32xf32>
    %c0_5 = arith.constant 0 : index
    %c0_6 = arith.constant 0 : index
    %14 = vector.load %arg4[%c0_5, %c0_6] : memref<32x384xf32, #tpu.memory_space<vmem>>, vector<32x160xf32>
    %cst_7 = arith.constant dense<0.000000e+00> : vector<16x160xf32>
    %15 = tpu.matmul %13, %14, %cst_7 {dimension_numbers = #tpu.dot_dimension_numbers<[1], [0], [0], [1], [0, 0, 1, 1], [], []>} : vector<16x32xf32>, vector<32x160xf32>, vector<16x160xf32> -> vector<16x160xf32>
    %16 = vector.extract_strided_slice %15 {offsets = [0, 0], sizes = [16, 32], strides = [1, 1]} : vector<16x160xf32> to vector<16x32xf32>
    %17 = vector.extract_strided_slice %15 {offsets = [0, 32], sizes = [16, 32], strides = [1, 1]} : vector<16x160xf32> to vector<16x32xf32>
    %18 = vector.extract_strided_slice %15 {offsets = [0, 64], sizes = [16, 32], strides = [1, 1]} : vector<16x160xf32> to vector<16x32xf32>
    %19 = vector.extract_strided_slice %15 {offsets = [0, 96], sizes = [16, 32], strides = [1, 1]} : vector<16x160xf32> to vector<16x32xf32>
    %20 = vector.extract_strided_slice %15 {offsets = [0, 128], sizes = [16, 32], strides = [1, 1]} : vector<16x160xf32> to vector<16x32xf32>
    %c0_8 = arith.constant 0 : index
    %c0_9 = arith.constant 0 : index
    %21 = vector.load %arg2[%c0_8, %c0_9] : memref<16x64xf32, #tpu.memory_space<vmem>>, vector<16x32xf32>
    %c0_10 = arith.constant 0 : index
    %c32 = arith.constant 32 : index
    %22 = vector.load %arg2[%c0_10, %c32] : memref<16x64xf32, #tpu.memory_space<vmem>>, vector<16x32xf32>
    %23 = arith.mulf %16, %21 : vector<16x32xf32>
    %24 = arith.mulf %19, %22 : vector<16x32xf32>
    %25 = arith.addf %23, %24 : vector<16x32xf32>
    %26 = arith.mulf %17, %21 : vector<16x32xf32>
    %27 = arith.mulf %20, %22 : vector<16x32xf32>
    %28 = arith.addf %26, %27 : vector<16x32xf32>
    %29 = tpu.iota {dimensions = array<i32: 1>} : vector<2x8x8xi32>
    %30 = tpu.iota {dimensions = array<i32: 2>} : vector<2x8x8xi32>
    %31 = arith.cmpi sge, %29, %30 : vector<2x8x8xi32>
    %c0_11 = arith.constant 0 : index
    %c160 = arith.constant 160 : index
    %32 = vector.load %arg4[%c0_11, %c160] : memref<32x384xf32, #tpu.memory_space<vmem>>, vector<32x32xf32>
    %cst_12 = arith.constant 0.000000e+00 : f32
    %33 = vector.broadcast %cst_12 : f32 to vector<16x32xf32>
    %34 = vector.extract_strided_slice %25 {offsets = [0, 0], sizes = [16, 8], strides = [1, 1]} : vector<16x32xf32> to vector<16x8xf32>
    %35 = vector.shape_cast %34 : vector<16x8xf32> to vector<2x8x8xf32>
    %36 = vector.extract_strided_slice %28 {offsets = [0, 0], sizes = [16, 8], strides = [1, 1]} : vector<16x32xf32> to vector<16x8xf32>
    %37 = vector.shape_cast %36 : vector<16x8xf32> to vector<2x8x8xf32>
    %38 = vector.extract_strided_slice %18 {offsets = [0, 0], sizes = [16, 8], strides = [1, 1]} : vector<16x32xf32> to vector<16x8xf32>
    %39 = vector.shape_cast %38 : vector<16x8xf32> to vector<2x8x8xf32>
    "tpu.trace_start"() <{level = 10 : i32, message = "bqd,bkd->bqk"}> : () -> ()
    %cst_13 = arith.constant dense<0.000000e+00> : vector<2x8x8xf32>
    %40 = tpu.matmul %35, %37, %cst_13 {dimension_numbers = #tpu.dot_dimension_numbers<[2], [2], [1], [1], [0, 0, 0, 1, 1, 1], [0], [0]>} : vector<2x8x8xf32>, vector<2x8x8xf32>, vector<2x8x8xf32> -> vector<2x8x8xf32>
    "tpu.trace_stop"() : () -> ()
    %cst_14 = arith.constant 0.353553385 : f32
    %41 = vector.broadcast %cst_14 : f32 to vector<2x8x8xf32>
    %42 = arith.mulf %40, %41 : vector<2x8x8xf32>
    %cst_15 = arith.constant -1.000000e+30 : f32
    %43 = vector.broadcast %cst_15 : f32 to vector<2x8x8xf32>
    %44 = arith.select %31, %42, %43 : vector<2x8x8xi1>, vector<2x8x8xf32>
    %cst_16 = arith.constant dense<0xFF800000> : vector<2x8xf32>
    %45 = vector.multi_reduction <maximumf>, %44, %cst_16 [2] : vector<2x8x8xf32> to vector<2x8xf32>
    %46 = vector.shape_cast %45 : vector<2x8xf32> to vector<2x8x1xf32>
    %47 = vector.broadcast %46 : vector<2x8x1xf32> to vector<2x8x8xf32>
    %48 = arith.subf %44, %47 : vector<2x8x8xf32>
    %49 = math.exp %48 : vector<2x8x8xf32>
    %cst_17 = arith.constant dense<0.000000e+00> : vector<2x8xf32>
    %50 = vector.multi_reduction <add>, %49, %cst_17 [2] : vector<2x8x8xf32> to vector<2x8xf32>
    %51 = vector.shape_cast %50 : vector<2x8xf32> to vector<2x8x1xf32>
    %52 = tpu.reciprocal %51 {approx = true} : vector<2x8x1xf32> -> vector<2x8x1xf32>
    %53 = vector.broadcast %52 : vector<2x8x1xf32> to vector<2x8x8xf32>
    %54 = arith.mulf %49, %53 : vector<2x8x8xf32>
    "tpu.trace_start"() <{level = 10 : i32, message = "bqk,bkd->bqd"}> : () -> ()
    %cst_18 = arith.constant dense<0.000000e+00> : vector<2x8x8xf32>
    %55 = tpu.matmul %54, %39, %cst_18 {dimension_numbers = #tpu.dot_dimension_numbers<[2], [1], [1], [2], [0, 0, 0, 1, 1, 2], [0], [0]>} : vector<2x8x8xf32>, vector<2x8x8xf32>, vector<2x8x8xf32> -> vector<2x8x8xf32>
    "tpu.trace_stop"() : () -> ()
    %56 = vector.shape_cast %55 : vector<2x8x8xf32> to vector<16x8xf32>
    %57 = vector.extract_strided_slice %32 {offsets = [0, 0], sizes = [8, 32], strides = [1, 1]} : vector<32x32xf32> to vector<8x32xf32>
    %cst_19 = arith.constant dense<0.000000e+00> : vector<16x32xf32>
    %58 = tpu.matmul %56, %57, %cst_19 {dimension_numbers = #tpu.dot_dimension_numbers<[1], [0], [0], [1], [0, 0, 1, 1], [], []>} : vector<16x8xf32>, vector<8x32xf32>, vector<16x32xf32> -> vector<16x32xf32>
    %59 = arith.addf %33, %58 : vector<16x32xf32>
    %60 = vector.extract_strided_slice %25 {offsets = [0, 8], sizes = [16, 8], strides = [1, 1]} : vector<16x32xf32> to vector<16x8xf32>
    %61 = vector.shape_cast %60 : vector<16x8xf32> to vector<2x8x8xf32>
    %62 = vector.extract_strided_slice %28 {offsets = [0, 8], sizes = [16, 8], strides = [1, 1]} : vector<16x32xf32> to vector<16x8xf32>
    %63 = vector.shape_cast %62 : vector<16x8xf32> to vector<2x8x8xf32>
    %64 = vector.extract_strided_slice %18 {offsets = [0, 8], sizes = [16, 8], strides = [1, 1]} : vector<16x32xf32> to vector<16x8xf32>
    %65 = vector.shape_cast %64 : vector<16x8xf32> to vector<2x8x8xf32>
    "tpu.trace_start"() <{level = 10 : i32, message = "bqd,bkd->bqk"}> : () -> ()
    %cst_20 = arith.constant dense<0.000000e+00> : vector<2x8x8xf32>
    %66 = tpu.matmul %61, %63, %cst_20 {dimension_numbers = #tpu.dot_dimension_numbers<[2], [2], [1], [1], [0, 0, 0, 1, 1, 1], [0], [0]>} : vector<2x8x8xf32>, vector<2x8x8xf32>, vector<2x8x8xf32> -> vector<2x8x8xf32>
    "tpu.trace_stop"() : () -> ()
    %cst_21 = arith.constant 0.353553385 : f32
    %67 = vector.broadcast %cst_21 : f32 to vector<2x8x8xf32>
    %68 = arith.mulf %66, %67 : vector<2x8x8xf32>
    %cst_22 = arith.constant -1.000000e+30 : f32
    %69 = vector.broadcast %cst_22 : f32 to vector<2x8x8xf32>
    %70 = arith.select %31, %68, %69 : vector<2x8x8xi1>, vector<2x8x8xf32>
    %cst_23 = arith.constant dense<0xFF800000> : vector<2x8xf32>
    %71 = vector.multi_reduction <maximumf>, %70, %cst_23 [2] : vector<2x8x8xf32> to vector<2x8xf32>
    %72 = vector.shape_cast %71 : vector<2x8xf32> to vector<2x8x1xf32>
    %73 = vector.broadcast %72 : vector<2x8x1xf32> to vector<2x8x8xf32>
    %74 = arith.subf %70, %73 : vector<2x8x8xf32>
    %75 = math.exp %74 : vector<2x8x8xf32>
    %cst_24 = arith.constant dense<0.000000e+00> : vector<2x8xf32>
    %76 = vector.multi_reduction <add>, %75, %cst_24 [2] : vector<2x8x8xf32> to vector<2x8xf32>
    %77 = vector.shape_cast %76 : vector<2x8xf32> to vector<2x8x1xf32>
    %78 = tpu.reciprocal %77 {approx = true} : vector<2x8x1xf32> -> vector<2x8x1xf32>
    %79 = vector.broadcast %78 : vector<2x8x1xf32> to vector<2x8x8xf32>
    %80 = arith.mulf %75, %79 : vector<2x8x8xf32>
    "tpu.trace_start"() <{level = 10 : i32, message = "bqk,bkd->bqd"}> : () -> ()
    %cst_25 = arith.constant dense<0.000000e+00> : vector<2x8x8xf32>
    %81 = tpu.matmul %80, %65, %cst_25 {dimension_numbers = #tpu.dot_dimension_numbers<[2], [1], [1], [2], [0, 0, 0, 1, 1, 2], [0], [0]>} : vector<2x8x8xf32>, vector<2x8x8xf32>, vector<2x8x8xf32> -> vector<2x8x8xf32>
    "tpu.trace_stop"() : () -> ()
    %82 = vector.shape_cast %81 : vector<2x8x8xf32> to vector<16x8xf32>
    %83 = vector.extract_strided_slice %32 {offsets = [8, 0], sizes = [8, 32], strides = [1, 1]} : vector<32x32xf32> to vector<8x32xf32>
    %cst_26 = arith.constant dense<0.000000e+00> : vector<16x32xf32>
    %84 = tpu.matmul %82, %83, %cst_26 {dimension_numbers = #tpu.dot_dimension_numbers<[1], [0], [0], [1], [0, 0, 1, 1], [], []>} : vector<16x8xf32>, vector<8x32xf32>, vector<16x32xf32> -> vector<16x32xf32>
    %85 = arith.addf %59, %84 : vector<16x32xf32>
    %86 = vector.extract_strided_slice %25 {offsets = [0, 16], sizes = [16, 8], strides = [1, 1]} : vector<16x32xf32> to vector<16x8xf32>
    %87 = vector.shape_cast %86 : vector<16x8xf32> to vector<2x8x8xf32>
    %88 = vector.extract_strided_slice %28 {offsets = [0, 16], sizes = [16, 8], strides = [1, 1]} : vector<16x32xf32> to vector<16x8xf32>
    %89 = vector.shape_cast %88 : vector<16x8xf32> to vector<2x8x8xf32>
    %90 = vector.extract_strided_slice %18 {offsets = [0, 16], sizes = [16, 8], strides = [1, 1]} : vector<16x32xf32> to vector<16x8xf32>
    %91 = vector.shape_cast %90 : vector<16x8xf32> to vector<2x8x8xf32>
    "tpu.trace_start"() <{level = 10 : i32, message = "bqd,bkd->bqk"}> : () -> ()
    %cst_27 = arith.constant dense<0.000000e+00> : vector<2x8x8xf32>
    %92 = tpu.matmul %87, %89, %cst_27 {dimension_numbers = #tpu.dot_dimension_numbers<[2], [2], [1], [1], [0, 0, 0, 1, 1, 1], [0], [0]>} : vector<2x8x8xf32>, vector<2x8x8xf32>, vector<2x8x8xf32> -> vector<2x8x8xf32>
    "tpu.trace_stop"() : () -> ()
    %cst_28 = arith.constant 0.353553385 : f32
    %93 = vector.broadcast %cst_28 : f32 to vector<2x8x8xf32>
    %94 = arith.mulf %92, %93 : vector<2x8x8xf32>
    %cst_29 = arith.constant -1.000000e+30 : f32
    %95 = vector.broadcast %cst_29 : f32 to vector<2x8x8xf32>
    %96 = arith.select %31, %94, %95 : vector<2x8x8xi1>, vector<2x8x8xf32>
    %cst_30 = arith.constant dense<0xFF800000> : vector<2x8xf32>
    %97 = vector.multi_reduction <maximumf>, %96, %cst_30 [2] : vector<2x8x8xf32> to vector<2x8xf32>
    %98 = vector.shape_cast %97 : vector<2x8xf32> to vector<2x8x1xf32>
    %99 = vector.broadcast %98 : vector<2x8x1xf32> to vector<2x8x8xf32>
    %100 = arith.subf %96, %99 : vector<2x8x8xf32>
    %101 = math.exp %100 : vector<2x8x8xf32>
    %cst_31 = arith.constant dense<0.000000e+00> : vector<2x8xf32>
    %102 = vector.multi_reduction <add>, %101, %cst_31 [2] : vector<2x8x8xf32> to vector<2x8xf32>
    %103 = vector.shape_cast %102 : vector<2x8xf32> to vector<2x8x1xf32>
    %104 = tpu.reciprocal %103 {approx = true} : vector<2x8x1xf32> -> vector<2x8x1xf32>
    %105 = vector.broadcast %104 : vector<2x8x1xf32> to vector<2x8x8xf32>
    %106 = arith.mulf %101, %105 : vector<2x8x8xf32>
    "tpu.trace_start"() <{level = 10 : i32, message = "bqk,bkd->bqd"}> : () -> ()
    %cst_32 = arith.constant dense<0.000000e+00> : vector<2x8x8xf32>
    %107 = tpu.matmul %106, %91, %cst_32 {dimension_numbers = #tpu.dot_dimension_numbers<[2], [1], [1], [2], [0, 0, 0, 1, 1, 2], [0], [0]>} : vector<2x8x8xf32>, vector<2x8x8xf32>, vector<2x8x8xf32> -> vector<2x8x8xf32>
    "tpu.trace_stop"() : () -> ()
    %108 = vector.shape_cast %107 : vector<2x8x8xf32> to vector<16x8xf32>
    %109 = vector.extract_strided_slice %32 {offsets = [16, 0], sizes = [8, 32], strides = [1, 1]} : vector<32x32xf32> to vector<8x32xf32>
    %cst_33 = arith.constant dense<0.000000e+00> : vector<16x32xf32>
    %110 = tpu.matmul %108, %109, %cst_33 {dimension_numbers = #tpu.dot_dimension_numbers<[1], [0], [0], [1], [0, 0, 1, 1], [], []>} : vector<16x8xf32>, vector<8x32xf32>, vector<16x32xf32> -> vector<16x32xf32>
    %111 = arith.addf %85, %110 : vector<16x32xf32>
    %112 = vector.extract_strided_slice %25 {offsets = [0, 24], sizes = [16, 8], strides = [1, 1]} : vector<16x32xf32> to vector<16x8xf32>
    %113 = vector.shape_cast %112 : vector<16x8xf32> to vector<2x8x8xf32>
    %114 = vector.extract_strided_slice %28 {offsets = [0, 24], sizes = [16, 8], strides = [1, 1]} : vector<16x32xf32> to vector<16x8xf32>
    %115 = vector.shape_cast %114 : vector<16x8xf32> to vector<2x8x8xf32>
    %116 = vector.extract_strided_slice %18 {offsets = [0, 24], sizes = [16, 8], strides = [1, 1]} : vector<16x32xf32> to vector<16x8xf32>
    %117 = vector.shape_cast %116 : vector<16x8xf32> to vector<2x8x8xf32>
    "tpu.trace_start"() <{level = 10 : i32, message = "bqd,bkd->bqk"}> : () -> ()
    %cst_34 = arith.constant dense<0.000000e+00> : vector<2x8x8xf32>
    %118 = tpu.matmul %113, %115, %cst_34 {dimension_numbers = #tpu.dot_dimension_numbers<[2], [2], [1], [1], [0, 0, 0, 1, 1, 1], [0], [0]>} : vector<2x8x8xf32>, vector<2x8x8xf32>, vector<2x8x8xf32> -> vector<2x8x8xf32>
    "tpu.trace_stop"() : () -> ()
    %cst_35 = arith.constant 0.353553385 : f32
    %119 = vector.broadcast %cst_35 : f32 to vector<2x8x8xf32>
    %120 = arith.mulf %118, %119 : vector<2x8x8xf32>
    %cst_36 = arith.constant -1.000000e+30 : f32
    %121 = vector.broadcast %cst_36 : f32 to vector<2x8x8xf32>
    %122 = arith.select %31, %120, %121 : vector<2x8x8xi1>, vector<2x8x8xf32>
    %cst_37 = arith.constant dense<0xFF800000> : vector<2x8xf32>
    %123 = vector.multi_reduction <maximumf>, %122, %cst_37 [2] : vector<2x8x8xf32> to vector<2x8xf32>
    %124 = vector.shape_cast %123 : vector<2x8xf32> to vector<2x8x1xf32>
    %125 = vector.broadcast %124 : vector<2x8x1xf32> to vector<2x8x8xf32>
    %126 = arith.subf %122, %125 : vector<2x8x8xf32>
    %127 = math.exp %126 : vector<2x8x8xf32>
    %cst_38 = arith.constant dense<0.000000e+00> : vector<2x8xf32>
    %128 = vector.multi_reduction <add>, %127, %cst_38 [2] : vector<2x8x8xf32> to vector<2x8xf32>
    %129 = vector.shape_cast %128 : vector<2x8xf32> to vector<2x8x1xf32>
    %130 = tpu.reciprocal %129 {approx = true} : vector<2x8x1xf32> -> vector<2x8x1xf32>
    %131 = vector.broadcast %130 : vector<2x8x1xf32> to vector<2x8x8xf32>
    %132 = arith.mulf %127, %131 : vector<2x8x8xf32>
    "tpu.trace_start"() <{level = 10 : i32, message = "bqk,bkd->bqd"}> : () -> ()
    %cst_39 = arith.constant dense<0.000000e+00> : vector<2x8x8xf32>
    %133 = tpu.matmul %132, %117, %cst_39 {dimension_numbers = #tpu.dot_dimension_numbers<[2], [1], [1], [2], [0, 0, 0, 1, 1, 2], [0], [0]>} : vector<2x8x8xf32>, vector<2x8x8xf32>, vector<2x8x8xf32> -> vector<2x8x8xf32>
    "tpu.trace_stop"() : () -> ()
    %134 = vector.shape_cast %133 : vector<2x8x8xf32> to vector<16x8xf32>
    %135 = vector.extract_strided_slice %32 {offsets = [24, 0], sizes = [8, 32], strides = [1, 1]} : vector<32x32xf32> to vector<8x32xf32>
    %cst_40 = arith.constant dense<0.000000e+00> : vector<16x32xf32>
    %136 = tpu.matmul %134, %135, %cst_40 {dimension_numbers = #tpu.dot_dimension_numbers<[1], [0], [0], [1], [0, 0, 1, 1], [], []>} : vector<16x8xf32>, vector<8x32xf32>, vector<16x32xf32> -> vector<16x32xf32>
    %137 = arith.addf %111, %136 : vector<16x32xf32>
    %138 = arith.addf %0, %137 : vector<16x32xf32>
    %139 = arith.mulf %138, %138 : vector<16x32xf32>
    %cst_41 = arith.constant dense<0.000000e+00> : vector<16xf32>
    %140 = vector.multi_reduction <add>, %139, %cst_41 [1] : vector<16x32xf32> to vector<16xf32>
    %141 = vector.shape_cast %140 : vector<16xf32> to vector<16x1xf32>
    %cst_42 = arith.constant 3.200000e+01 : f32
    %142 = vector.broadcast %cst_42 : f32 to vector<16x1xf32>
    %143 = arith.divf %141, %142 : vector<16x1xf32>
    %cst_43 = arith.constant 9.99999974E-6 : f32
    %144 = vector.broadcast %cst_43 : f32 to vector<16x1xf32>
    %145 = arith.addf %143, %144 : vector<16x1xf32>
    %146 = math.rsqrt %145 : vector<16x1xf32>
    %147 = vector.broadcast %146 : vector<16x1xf32> to vector<16x32xf32>
    %148 = arith.mulf %138, %147 : vector<16x32xf32>
    %c1 = arith.constant 1 : index
    %c0_44 = arith.constant 0 : index
    %149 = vector.load %arg3[%c1, %c0_44] : memref<2x32xf32, #tpu.memory_space<vmem>>, vector<1x32xf32>
    %150 = vector.broadcast %149 : vector<1x32xf32> to vector<16x32xf32>
    %151 = arith.mulf %148, %150 : vector<16x32xf32>
    %c0_45 = arith.constant 0 : index
    %c192 = arith.constant 192 : index
    %152 = vector.load %arg4[%c0_45, %c192] : memref<32x384xf32, #tpu.memory_space<vmem>>, vector<32x192xf32>
    %cst_46 = arith.constant dense<0.000000e+00> : vector<16x192xf32>
    %153 = tpu.matmul %151, %152, %cst_46 {dimension_numbers = #tpu.dot_dimension_numbers<[1], [0], [0], [1], [0, 0, 1, 1], [], []>} : vector<16x32xf32>, vector<32x192xf32>, vector<16x192xf32> -> vector<16x192xf32>
    %154 = vector.extract_strided_slice %153 {offsets = [0, 0], sizes = [16, 96], strides = [1, 1]} : vector<16x192xf32> to vector<16x96xf32>
    %155 = vector.extract_strided_slice %153 {offsets = [0, 96], sizes = [16, 96], strides = [1, 1]} : vector<16x192xf32> to vector<16x96xf32>
    %156 = arith.negf %154 : vector<16x96xf32>
    %157 = math.exp %156 : vector<16x96xf32>
    %cst_47 = arith.constant 1.000000e+00 : f32
    %158 = vector.broadcast %cst_47 : f32 to vector<16x96xf32>
    %159 = arith.addf %158, %157 : vector<16x96xf32>
    %160 = arith.divf %158, %159 : vector<16x96xf32>
    %161 = arith.mulf %154, %160 : vector<16x96xf32>
    %162 = arith.mulf %161, %155 : vector<16x96xf32>
    %c0_48 = arith.constant 0 : index
    %c0_49 = arith.constant 0 : index
    %163 = vector.load %arg5[%c0_48, %c0_49] : memref<96x32xf32, #tpu.memory_space<vmem>>, vector<96x32xf32>
    %cst_50 = arith.constant dense<0.000000e+00> : vector<16x32xf32>
    %164 = tpu.matmul %162, %163, %cst_50 {dimension_numbers = #tpu.dot_dimension_numbers<[1], [0], [0], [1], [0, 0, 1, 1], [], []>} : vector<16x96xf32>, vector<96x32xf32>, vector<16x32xf32> -> vector<16x32xf32>
    %165 = arith.addf %138, %164 : vector<16x32xf32>
    %c0_51 = arith.constant 0 : index
    %c0_52 = arith.constant 0 : index
    %166 = vector.load %arg6[%c0_51, %c0_52] : memref<16x32xf32, #tpu.memory_space<vmem>>, vector<16x32xf32>
    tpu.vector_store %arg6[%c0_51, %c0_52], %165 {strides = array<i32>} : memref<16x32xf32, #tpu.memory_space<vmem>>, vector<16x32xf32>,
    return
  }
  func.func @transform_0(%arg0: i32) -> (i32, i32) {
    %c0_i32 = arith.constant 0 : i32
    %c0_i32_0 = arith.constant 0 : i32
    %c0_i32_1 = arith.constant 0 : i32
    return %c0_i32, %c0_i32_0 : i32, i32
  }
  func.func @transform_1(%arg0: i32) -> (i32, i32) {
    %c0_i32 = arith.constant 0 : i32
    %c0_i32_0 = arith.constant 0 : i32
    %c0_i32_1 = arith.constant 0 : i32
    return %c0_i32, %c0_i32_0 : i32, i32
  }
  func.func @transform_2(%arg0: i32) -> (i32, i32) {
    %c0_i32 = arith.constant 0 : i32
    %c0_i32_0 = arith.constant 0 : i32
    %c0_i32_1 = arith.constant 0 : i32
    return %c0_i32, %c0_i32_0 : i32, i32
  }
  func.func @transform_3(%arg0: i32) -> (i32, i32) {
    %c0_i32 = arith.constant 0 : i32
    %c0_i32_0 = arith.constant 0 : i32
    %c0_i32_1 = arith.constant 0 : i32
    return %c0_i32, %c0_i32_0 : i32, i32
  }
  func.func @transform_4(%arg0: i32) -> (i32, i32) {
    %c0_i32 = arith.constant 0 : i32
    %c0_i32_0 = arith.constant 0 : i32
    %c0_i32_1 = arith.constant 0 : i32
    return %c0_i32, %c0_i32_0 : i32, i32
  }
  func.func @transform_5(%arg0: i32) -> (i32, i32) {
    %c0_i32 = arith.constant 0 : i32
    %c0_i32_0 = arith.constant 0 : i32
    %c0_i32_1 = arith.constant 0 : i32
    return %c0_i32, %c0_i32_0 : i32, i32
  }
}

</mosaic_0001>

<bundles_post_ra>
// kernel: tpu_custom_call.1
= control target key start
LH: loop header
LB: loop body
LE: loop exit
PB: predicated region body
PF: predicated region fallthrough
CT: control target
= control target key end

     0   :  { %vm25_vm0 = vcmask 261120   ;;  %s2973_s0 = inlined_call_operand.vmem [shape: f32[16,32], index: 0, kind: input, shape index: {}]   ;;  %s2974_s1 = inlined_call_operand.vmem [shape: f32[16,64], index: 1, kind: input, shape index: {}]   ;;  %s2975_s2 = inlined_call_operand.vmem [shape: f32[2,32], index: 2, kind: input, shape index: {}]   ;;  %s2976_s3 = inlined_call_operand.vmem [shape: f32[32,384], index: 3, kind: input, shape index: {}]   ;;  %s2977_s4 = inlined_call_operand.vmem [shape: f32[96,32], index: 4, kind: input, shape index: {}]   ;;  %s2978_s5 = inlined_call_operand.hbm [shape: f32[16,32], index: 5, kind: output, shape index: {}]  }
   0x1   :  { %v2608_v0 = vld [vmem:[%s2973_s0] sm:$0xff]  ;;  %v2613_v1 = vld [vmem:[%s2973_s0 + $0x8] sm:$0xff] }
   0x2   :  { %10 = vsyncpa [#allocation3], 0  ;;  %v23_v2 = vmul.f32 %v2608_v0, %v2608_v0  ;;  %v24_v3 = vmul.f32 %v2613_v1, %v2613_v1  ;;  %v2624_v6 = vld [vmem:[%s2976_s3 + $0x8] sm:$0xff]  ;;  %v2629_v7 = vld [vmem:[%s2976_s3 + $0x20] sm:$0xff]  ;;  %v2558_v13 = vmov 0.0   ;;  %s2559_s14 = smov 96  }
   0x3   :  { %v48_v8 = vld [vmem:[%s2976_s3] sm:$0xff]  ;;  %v2403_v9 = vpack.c.bf16 %v2629_v7, %v2624_v6  ;;  %v50_v10 = vld [vmem:[%s2976_s3 + $0x18] sm:$0xff]  ;;  %v2647_v12 = vld [vmem:[%s2976_s3 + $0x50] sm:$0xff]  ;;  %126 = vmatprep.mubr.f32.mxu0 %v2558_v13  ;;  %2286 = vmatprep.subr.mxu1 %v2558_v13  ;;  %s2560_s17 = smov 32   ;;  %s2561_s18 = smov 64   ;;  %vm2562_vm1 = vmmov 0  }
   0x4   :  { %v26_v4 = vsel %vm25_vm0, %v23_v2, 0.0  ;;  %v29_v5 = vsel %vm25_vm0, %v24_v3, 0.0  ;;  %v2642_v11 = vld [vmem:[%s2976_s3 + $0x38] sm:$0xff]  ;;  %v2405_v14 = vpack.c.bf16 %v50_v10, %v48_v8  ;;  %v52_v16 = vld [vmem:[%s2976_s3 + $0x30] sm:$0xff]  ;;  %v54_v17 = vld [vmem:[%s2976_s3 + $0x48] sm:$0xff]  ;;  %2288 = vmatprep.mubr.msk.f32.mxu1 %vm2562_vm1, %v2558_v13  ;;  %vm197_vm2 = vcmask 64512  }
   0x5   :  { %27 = vadd.xlane.f32.xlu0 %v26_v4  ;;  %v2407_v15 = vpack.c.bf16 %v2647_v12, %v2642_v11  ;;  %2404 = vmatprep.subr.bf16.mxu0 %v2403_v9  ;;  %v2409_v18 = vpack.c.bf16 %v54_v17, %v52_v16  ;;  %v139_v19 = vld [vmem:[%s2974_s1] sm:$0xff]  ;;  %v2667_v20 = vld [vmem:[%s2974_s1 + $0x8] sm:$0xff]  ;;  %v189_v2 = vlaneseq  ;;  %s2563_s20 = smov 88   ;;  %s2564_s21 = smov 120   ;;  %vm1934_vm4 = vcmask 523264  }
   0x6   :  { %2406 = vmatpush1.bf16.msra.mxu0 %v2405_v14  ;;  %171 = vrot.lane.b32.xlu1 %v139_v19, %s2559_s14  ;;  %v2176_v28 = vld [vmem:[%s2975_s2] ss:$0 sm:$0xff]  ;;  %s2565_s22 = smov 80   ;;  %s2566_s23 = smov 112   ;;  %vm2074_vm5 = vcmask 785408  }
   0x7   :  { %2408 = vmatprep.subr.bf16.mxu0 %v2407_v15  ;;  %v190_v3 = vshrl.u32 %v189_v2, 7  ;;  %v192_v4 = vand.u32 127, %v189_v2  ;;  %s2567_s0 = smov 56   ;;  %s2568_s24 = smov 48  }
   0x8   :  { %s2569_s25 = smov 72   ;;  %s2570_s26 = smov 104  }
   0x9   :  { %30 = vadd.xlane.f32.xlu0 %v29_v5  ;;  %vm2728_vm3 = vcmp.ge.s32.totalorder %v190_v3, %v192_v4  ;;  %s2571_s27 = smov 40  }
   0xa   :  { %2410 = vmatpush1.bf16.msra.mxu0 %v2409_v18  ;;  %173 = vrot.lane.b32.xlu1 %v2667_v20, %s2559_s14 }
   0xb   :  { %2276 = vmatprep.subr.mxu0 %v2558_v13 }
   0xe   :  { %145 = vrot.lane.b32.xlu1 %v139_v19, %s2561_s18 }
  0x12   :  { %165 = vrot.lane.b32.xlu1 %v2667_v20, %s2560_s17 }
  0x1f   :  { %163 = vrot.lane.b32.xlu0 %v139_v19, %s2560_s17 }
  0x78   :  { %v172_v34 = vpop.permute.xlu1 %171 }
  0x7c   :  { %v174_v35 = vpop.permute.xlu1 %173 }
  0x80   :  { %v146_v36 = vpop.permute.xlu1 %145 }
  0x84   :  { %v166_v45 = vpop.permute.xlu1 %165 }
  0x92   :  { %v28_v21 = vpop.xlane.xlu0 %27 }
  0x93   :  { %v33_v22 = vmul.f32 0.03125, %v28_v21 }
  0x95   :  { %v35_v23 = vadd.f32 1e-05, %v33_v22 }
  0x96   :  { %v31_v24 = vpop.xlane.xlu0 %30 }
  0x97   :  { %2486 = vrsqrt.f32 %v35_v23  ;;  %v34_v25 = vmul.f32 0.03125, %v31_v24 }
  0x99   :  { %v36_v26 = vadd.f32 1e-05, %v34_v25 }
  0x9a   :  { %v164_v44 = vpop.permute.xlu0 %163 }
  0x9b   :  { %2488 = vrsqrt.f32 %v36_v26 }
  0xa1   :  { %v2487_v27 = vpop.eup %2486 }
  0xa2   :  { %v39_v29 = vmul.f32 %v2487_v27, %v2608_v0 }
  0xa4   :  { %v46_v30 = vmul.f32 %v2176_v28, %v39_v29 }
  0xa5   :  { %v2489_v31 = vpop.eup %2488 }
  0xa6   :  { %2177 = vmatmul.mubr.msk.f32.vlgmr.msra.gmra.mrb[0].mxu0 %vm25_vm0, %v46_v30  ;;  %v40_v32 = vmul.f32 %v2489_v31, %v2613_v1 }
  0xa7   :  { %132 = vmatprep.mubr.f32.mxu0 %v2558_v13 }
  0xa8   :  { %v47_v33 = vmul.f32 %v2176_v28, %v40_v32 }
  0xaa   :  { %2178 = vmatmul.mubr.msk.f32.gmra.mrb[2].mxu0 %vm25_vm0, %v47_v33 }
  0xab   :  { %2278 = vmatprep.mubr.msk.f32.mxu0 %vm2562_vm1, %v2558_v13 }
 0x179   :  { %v2683_v37 = vpop.f32.mrb[0].mxu0 }
 0x17a   :  { %v130_v38 = vpop.f32.mrb[1].mxu0  ;;  %v151_v39 = vmul.f32 %v146_v36, %v2683_v37  ;;  %v169_v46 = vmul.f32 %v164_v44, %v2683_v37  ;;  %v141_v55 = vmul.f32 %v139_v19, %v2683_v37 }
 0x17b   :  { %v177_v40 = vmul.f32 %v172_v34, %v130_v38 }
 0x17c   :  { %155 = vrot.lane.b32.xlu0 %v151_v39, %s2560_s17 }
 0x17d   :  { %181 = vrot.lane.b32.xlu1 %v177_v40, %s2560_s17  ;;  %v2688_v41 = vpop.f32.mrb[2].mxu0 }
 0x17e   :  { %v136_v42 = vpop.f32.mrb[3].mxu0  ;;  %v170_v49 = vmul.f32 %v166_v45, %v2688_v41  ;;  %v142_v59 = vmul.f32 %v2667_v20, %v2688_v41 }
 0x17f   :  { %v178_v43 = vmul.f32 %v174_v35, %v136_v42 }
 0x181   :  { %183 = vrot.lane.b32.xlu1 %v178_v43, %s2560_s17 }
 0x185   :  { %147 = vrot.lane.b32.xlu1 %v2667_v20, %s2561_s18 }
 0x1ee   :  { %v156_v54 = vpop.permute.xlu0 %155 }
 0x1ef   :  { %v182_v47 = vpop.permute.xlu1 %181  ;;  %v2711_v57 = vadd.f32 %v156_v54, %v141_v55 }
 0x1f0   :  { %v2698_v48 = vadd.f32 %v182_v47, %v169_v46 }
 0x1f2   :  { %195 = vrot.lane.b32.xlu1 %v2698_v48, %s2559_s14 }
 0x1f3   :  { %v184_v50 = vpop.permute.xlu1 %183 }
 0x1f4   :  { %v2703_v51 = vadd.f32 %v184_v50, %v170_v49 }
 0x1f6   :  { %274 = vrot.lane.b32.xlu1 %v2703_v51, %s2559_s14 }
 0x1f7   :  { %v148_v52 = vpop.permute.xlu1 %147 }
 0x1f8   :  { %v152_v53 = vmul.f32 %v148_v52, %v2688_v41 }
 0x1fa   :  { %157 = vrot.lane.b32.xlu0 %v152_v53, %s2560_s17 }
 0x264   :  { %v196_v56 = vpop.permute.xlu1 %195 }
 0x265   :  { %2277 = vmatpush3.xpose.msk.msra.mxu0 %vm197_vm2, %v196_v56 }
 0x266   :  { %2281 = vmatprep.subr.mxu0 %v2558_v13 }
 0x268   :  { %v275_v58 = vpop.permute.xlu1 %274  ;;  %2279 = vmatmul.mubr.msk.f32.vlgmr.msra.gmra.mrb[4].mxu0 %vm197_vm2, %v2711_v57 }
 0x269   :  { %2282 = vmatpush3.xpose.msk.msra.mxu0 %vm197_vm2, %v275_v58  ;;  %2283 = vmatprep.mubr.msk.f32.mxu0 %vm2562_vm1, %v2558_v13 }
 0x26a   :  { %2291 = vmatprep.subr.mxu0 %v2558_v13 }
 0x26c   :  { %v158_v60 = vpop.permute.xlu0 %157 }
 0x26d   :  { %v2722_v61 = vadd.f32 %v158_v60, %v142_v59 }
 0x26f   :  { %2284 = vmatmul.mubr.msk.f32.vlgmr.msra.gmra.mrb[6].mxu0 %vm197_vm2, %v2722_v61 }
 0x270   :  { %2293 = vmatprep.mubr.msk.f32.mxu0 %vm2562_vm1, %v2558_v13 }
 0x33b   :  { %v269_v62 = vpop.f32.mrb[4].mxu0 }
 0x33c   :  { %v2280_v63 = vpop.f32.mrb[5].mxu0  ;;  %v351_v21 = vmul.f32 0.35355338, %v269_v62 }
 0x33e   :  { %v353_v22 = vsel %vm2728_vm3, %v351_v21, -1e+30 }
 0x33f   :  { %v355_v23 = vsel %vm197_vm2, %v353_v22, -inf }
 0x342   :  { %v347_v5 = vpop.f32.mrb[6].mxu0 }
 0x343   :  { %v352_v8 = vmul.f32 0.35355338, %v347_v5  ;;  %v2285_v9 = vpop.f32.mrb[7].mxu0 }
 0x345   :  { %v354_v14 = vsel %vm2728_vm3, %v352_v8, -1e+30 }
 0x346   :  { %v358_v15 = vsel %vm197_vm2, %v354_v14, -inf }
 0x347   :  { %359 = vmax.xlane.f32.xlu1 %v358_v15 }
 0x358   :  { %611 = vrot.lane.b32.xlu1 %v2703_v51, %s2563_s20 }
 0x35c   :  { %609 = vrot.lane.b32.xlu1 %v2722_v61, %s2564_s21 }
 0x3d4   :  { %v360_v16 = vpop.xlane.xlu1 %359 }
 0x3d5   :  { %v362_v17 = vsub.f32 %v354_v14, %v360_v16 }
 0x3d7   :  { %v365_v18 = vmul.f32 1.442695, %v362_v17 }
 0x3d8   :  { %v612_v27 = vpop.permute.xlu1 %611 }
 0x3d9   :  { %2490 = vpow2.f32 %v365_v18 }
 0x3dc   :  { %v610_v29 = vpop.permute.xlu1 %609 }
 0x3e3   :  { %v2491_v19 = vpop.eup %2490 }
 0x3e4   :  { %v370_v20 = vsel %vm197_vm2, %v2491_v19, 0.0 }
 0x3e5   :  { %371 = vadd.xlane.f32.xlu0 %v370_v20 }
 0x3fb   :  { %455 = vrot.lane.b32.xlu0 %v2688_v41, %s2561_s18 }
 0x41a   :  { %356 = vmax.xlane.f32.xlu0 %v355_v23 }
 0x430   :  { %378 = vrot.lane.b32.xlu0 %v2683_v37, %s2561_s18 }
 0x434   :  { %531 = vrot.lane.b32.xlu0 %v2711_v57, %s2564_s21 }
 0x472   :  { %v372_v24 = vpop.xlane.xlu0 %371 }
 0x473   :  { %2492 = vrcp.f32 %v372_v24 }
 0x476   :  { %v456_v25 = vpop.permute.xlu0 %455 }
 0x477   :  { %2292 = vmatpush3.msra.mxu0 %v456_v25 }
 0x478   :  { %2301 = vmatprep.subr.mxu0 %v2558_v13 }
 0x47d   :  { %v2493_v26 = vpop.eup %2492 }
 0x47e   :  { %v376_v28 = vmul.f32 %v2493_v26, %v2491_v19 }
 0x480   :  { %2294 = vmatmul.mubr.msk.f32.vlgmr.msra.gmra.mrb[8].mxu0 %vm197_vm2, %v376_v28 }
 0x481   :  { %2302 = vmatpush3.xpose.msk.msra.mxu0 %vm197_vm2, %v612_v27  ;;  %2303 = vmatprep.mubr.msk.f32.mxu0 %vm2562_vm1, %v2558_v13 }
 0x482   :  { %2311 = vmatprep.subr.mxu0 %v2558_v13 }
 0x484   :  { %2304 = vmatmul.mubr.msk.f32.vlgmr.msra.gmra.mrb[10].mxu0 %vm197_vm2, %v610_v29 }
 0x485   :  { %2313 = vmatprep.mubr.msk.f32.mxu0 %vm2562_vm1, %v2558_v13 }
 0x4a7   :  { %v357_v30 = vpop.xlane.xlu0 %356 }
 0x4a8   :  { %v361_v31 = vsub.f32 %v353_v22, %v357_v30 }
 0x4aa   :  { %v363_v32 = vmul.f32 1.442695, %v361_v31 }
 0x4ab   :  { %v379_v33 = vpop.permute.xlu0 %378 }
 0x4ac   :  { %2494 = vpow2.f32 %v363_v32  ;;  %2287 = vmatpush3.msra.mxu1 %v379_v33 }
 0x4ad   :  { %2296 = vmatprep.subr.mxu1 %v2558_v13 }
 0x4af   :  { %v532_v44 = vpop.permute.xlu0 %531 }
 0x4b6   :  { %v2495_v34 = vpop.eup %2494 }
 0x4b7   :  { %v367_v35 = vsel %vm197_vm2, %v2495_v34, 0.0 }
 0x4b8   :  { %368 = vadd.xlane.f32.xlu1 %v367_v35 }
 0x4c9   :  { %533 = vrot.lane.b32.xlu1 %v2698_v48, %s2563_s20 }
 0x545   :  { %v369_v36 = vpop.xlane.xlu1 %368 }
 0x546   :  { %2496 = vrcp.f32 %v369_v36 }
 0x549   :  { %v534_v40 = vpop.permute.xlu1 %533 }
 0x550   :  { %v2497_v38 = vpop.eup %2496 }
 0x551   :  { %v375_v39 = vmul.f32 %v2497_v38, %v2495_v34 }
 0x553   :  { %2289 = vmatmul.mubr.msk.f32.vlgmr.msra.gmra.mrb[0].mxu1 %vm197_vm2, %v375_v39  ;;  %v2761_v42 = vpop.f32.mrb[8].mxu0 }
 0x554   :  { %2297 = vmatpush3.xpose.msk.msra.mxu1 %vm197_vm2, %v534_v40  ;;  %v2295_v43 = vpop.f32.mrb[9].mxu0  ;;  %2298 = vmatprep.mubr.msk.f32.mxu1 %vm2562_vm1, %v2558_v13 }
 0x555   :  { %2306 = vmatprep.subr.mxu1 %v2558_v13 }
 0x557   :  { %2299 = vmatmul.mubr.msk.f32.vlgmr.msra.gmra.mrb[2].mxu1 %vm197_vm2, %v532_v44  ;;  %v683_v45 = vpop.f32.mrb[10].mxu0 }
 0x558   :  { %v688_v46 = vmul.f32 0.35355338, %v683_v45  ;;  %v2305_v47 = vpop.f32.mrb[11].mxu0  ;;  %2308 = vmatprep.mubr.msk.f32.mxu1 %vm2562_vm1, %v2558_v13 }
 0x55a   :  { %v690_v49 = vsel %vm2728_vm3, %v688_v46, -1e+30 }
 0x55b   :  { %v694_v50 = vsel %vm197_vm2, %v690_v49, -inf }
 0x55c   :  { %695 = vmax.xlane.f32.xlu1 %v694_v50 }
 0x56d   :  { %1037 = vrot.lane.b32.xlu1 %v2698_v48, %s2565_s22 }
 0x571   :  { %1035 = vrot.lane.b32.xlu1 %v2711_v57, %s2566_s23 }
 0x575   :  { %1113 = vrot.lane.b32.xlu1 %v2722_v61, %s2566_s23 }
 0x5e9   :  { %v696_v52 = vpop.xlane.xlu1 %695 }
 0x5ea   :  { %v698_v53 = vsub.f32 %v690_v49, %v696_v52 }
 0x5ec   :  { %v701_v54 = vmul.f32 1.442695, %v698_v53 }
 0x5ed   :  { %v1038_v8 = vpop.permute.xlu1 %1037 }
 0x5ee   :  { %2498 = vpow2.f32 %v701_v54 }
 0x5f1   :  { %v1036_v15 = vpop.permute.xlu1 %1035 }
 0x5f8   :  { %v2499_v55 = vpop.eup %2498 }
 0x5f9   :  { %v706_v56 = vsel %vm197_vm2, %v2499_v55, 0.0 }
 0x5fa   :  { %707 = vadd.xlane.f32.xlu0 %v706_v56 }
 0x610   :  { %789 = vrot.lane.b32.xlu0 %v2688_v41, %s2567_s0 }
 0x614   :  { %1115 = vrot.lane.b32.xlu0 %v2703_v51, %s2565_s22 }
 0x626   :  { %v2779_v58 = vpop.f32.mrb[0].mxu1 }
 0x627   :  { %v2290_v59 = vpop.f32.mrb[1].mxu1 }
 0x62a   :  { %v605_v60 = vpop.f32.mrb[2].mxu1 }
 0x62b   :  { %v687_v62 = vmul.f32 0.35355338, %v605_v60  ;;  %v2300_v63 = vpop.f32.mrb[3].mxu1 }
 0x62d   :  { %v689_v2 = vsel %vm2728_vm3, %v687_v62, -1e+30 }
 0x62e   :  { %v691_v3 = vsel %vm197_vm2, %v689_v2, -inf }
 0x633   :  { %692 = vmax.xlane.f32.xlu0 %v691_v3 }
 0x649   :  { %713 = vrot.lane.b32.xlu0 %v2683_v37, %s2567_s0 }
 0x64d   :  { %866 = vrot.lane.b32.xlu0 %v2629_v7, %s2559_s14 }
 0x651   :  { %1217 = vrot.lane.b32.xlu0 %v2683_v37, %s2568_s24 }
 0x655   :  { %1293 = vrot.lane.b32.xlu0 %v2688_v41, %s2568_s24 }
 0x659   :  { %1370 = vrot.lane.b32.xlu0 %v2642_v11, %s2559_s14 }
 0x65d   :  { %1458 = vrot.lane.b32.xlu0 %v2698_v48, %s2569_s25 }
 0x661   :  { %1456 = vrot.lane.b32.xlu0 %v2711_v57, %s2570_s26  ;;  %v1114_v57 = vpop.permute.xlu1 %1113 }
 0x687   :  { %v708_v4 = vpop.xlane.xlu0 %707 }
 0x688   :  { %2500 = vrcp.f32 %v708_v4 }
 0x68b   :  { %v790_v5 = vpop.permute.xlu0 %789 }
 0x68c   :  { %2312 = vmatpush3.msra.mxu0 %v790_v5 }
 0x68d   :  { %2326 = vmatprep.subr.mxu0 %v2558_v13 }
 0x68f   :  { %v1116_v48 = vpop.permute.xlu0 %1115 }
 0x692   :  { %v2501_v9 = vpop.eup %2500 }
 0x693   :  { %v712_v14 = vmul.f32 %v2501_v9, %v2499_v55 }
 0x695   :  { %2314 = vmatmul.mubr.msk.f32.vlgmr.msra.gmra.mrb[12].mxu0 %vm197_vm2, %v712_v14 }
 0x696   :  { %2327 = vmatpush3.xpose.msk.msra.mxu0 %vm197_vm2, %v1038_v8  ;;  %2328 = vmatprep.mubr.msk.f32.mxu0 %vm2562_vm1, %v2558_v13 }
 0x697   :  { %2331 = vmatprep.subr.mxu0 %v2558_v13 }
 0x699   :  { %2329 = vmatmul.mubr.msk.f32.vlgmr.msra.gmra.mrb[14].mxu0 %vm197_vm2, %v1036_v15 }
 0x69a   :  { %2332 = vmatpush3.xpose.msk.msra.mxu0 %vm197_vm2, %v1116_v48  ;;  %2333 = vmatprep.mubr.msk.f32.mxu0 %vm2562_vm1, %v2558_v13 }
 0x69b   :  { %2341 = vmatprep.subr.mxu0 %v2558_v13 }
 0x69d   :  { %2334 = vmatmul.mubr.msk.f32.vlgmr.msra.gmra.mrb[16].mxu0 %vm197_vm2, %v1114_v57 }
 0x69e   :  { %2343 = vmatprep.mubr.msk.f32.mxu0 %vm2562_vm1, %v2558_v13 }
 0x6c0   :  { %v693_v16 = vpop.xlane.xlu0 %692 }
 0x6c1   :  { %v697_v17 = vsub.f32 %v689_v2, %v693_v16 }
 0x6c3   :  { %v699_v18 = vmul.f32 1.442695, %v697_v17 }
 0x6c4   :  { %v714_v19 = vpop.permute.xlu0 %713 }
 0x6c5   :  { %2502 = vpow2.f32 %v699_v18  ;;  %2307 = vmatpush3.msra.mxu1 %v714_v19 }
 0x6c8   :  { %v867_v20 = vpop.permute.xlu0 %866 }
 0x6c9   :  { %2316 = vmatprep.subr.mxu1 %v867_v20 }
 0x6cc   :  { %v1218_v21 = vpop.permute.xlu0 %1217 }
 0x6cf   :  { %v2503_v22 = vpop.eup %2502 }
 0x6d0   :  { %v1294_v23 = vpop.permute.xlu0 %1293  ;;  %v703_v24 = vsel %vm197_vm2, %v2503_v22, 0.0 }
 0x6d1   :  { %704 = vadd.xlane.f32.xlu1 %v703_v24  ;;  %2342 = vmatpush3.msra.mxu0 %v1294_v23 }
 0x6d2   :  { %2351 = vmatprep.subr.mxu0 %v2558_v13 }
 0x6d4   :  { %v1371_v63 = vpop.permute.xlu0 %1370 }
 0x6d8   :  { %v1459_v2 = vpop.permute.xlu0 %1458 }
 0x75e   :  { %v705_v25 = vpop.xlane.xlu1 %704 }
 0x75f   :  { %2504 = vrcp.f32 %v705_v25 }
 0x768   :  { %v861_v26 = vpop.f32.mrb[12].mxu0 }
 0x769   :  { %v2505_v27 = vpop.eup %2504  ;;  %v2315_v28 = vpop.f32.mrb[13].mxu0 }
 0x76a   :  { %v711_v29 = vmul.f32 %v2505_v27, %v2503_v22 }
 0x76c   :  { %2309 = vmatmul.mubr.msk.f32.vlgmr.msra.gmra.mrb[4].mxu1 %vm197_vm2, %v711_v29  ;;  %v1109_v30 = vpop.f32.mrb[14].mxu0 }
 0x76d   :  { %v1191_v31 = vmul.f32 0.35355338, %v1109_v30  ;;  %v2330_v32 = vpop.f32.mrb[15].mxu0  ;;  %2317 = vmatpush3.msra.mxu1 %v867_v20 }
 0x76f   :  { %v1193_v33 = vsel %vm2728_vm3, %v1191_v31, -1e+30 }
 0x770   :  { %v1187_v34 = vpop.f32.mrb[16].mxu0  ;;  %v1195_v35 = vsel %vm197_vm2, %v1193_v33, -inf }
 0x771   :  { %v1192_v36 = vmul.f32 0.35355338, %v1187_v34  ;;  %1196 = vmax.xlane.f32.xlu1 %v1195_v35  ;;  %v2335_v38 = vpop.f32.mrb[17].mxu0 }
 0x773   :  { %v1194_v39 = vsel %vm2728_vm3, %v1192_v36, -1e+30 }
 0x774   :  { %v1198_v40 = vsel %vm197_vm2, %v1194_v39, -inf }
 0x775   :  { %1199 = vmax.xlane.f32.xlu1 %v1198_v40 }
 0x7fe   :  { %v1197_v43 = vpop.xlane.xlu1 %1196 }
 0x7ff   :  { %v1201_v44 = vsub.f32 %v1193_v33, %v1197_v43 }
 0x801   :  { %v1203_v45 = vmul.f32 1.442695, %v1201_v44 }
 0x802   :  { %v1200_v46 = vpop.xlane.xlu1 %1199 }
 0x803   :  { %2506 = vpow2.f32 %v1203_v45  ;;  %v1202_v47 = vsub.f32 %v1194_v39, %v1200_v46  ;;  %v1905_v46 = vld [vmem:[%s2976_s3 + $0x28] sm:$0xff] }
 0x805   :  { %v1205_v49 = vmul.f32 1.442695, %v1202_v47  ;;  %v2471_v47 = vpack.i.bf16 %v1905_v46, %v2629_v7  ;;  %v2071_v46 = vld [vmem:[%s2977_s4 + $0x48] sm:$0xff] }
 0x807   :  { %2508 = vpow2.f32 %v1205_v49 }
 0x80d   :  { %v2507_v50 = vpop.eup %2506 }
 0x80e   :  { %v1207_v52 = vsel %vm197_vm2, %v2507_v50, 0.0 }
 0x80f   :  { %1208 = vadd.xlane.f32.xlu1 %v1207_v52 }
 0x811   :  { %v2509_v53 = vpop.eup %2508 }
 0x812   :  { %v1210_v54 = vsel %vm197_vm2, %v2509_v53, 0.0 }
 0x813   :  { %1211 = vadd.xlane.f32.xlu1 %v1210_v54 }
 0x824   :  { %951 = vrot.lane.b32.xlu1 %v2624_v6, %s2559_s14 }
 0x828   :  { %1536 = vrot.lane.b32.xlu1 %v2703_v51, %s2569_s25 }
 0x82c   :  { %1534 = vrot.lane.b32.xlu1 %v2722_v61, %s2570_s26 }
 0x83f   :  { %v785_v55 = vpop.f32.mrb[4].mxu1 }
 0x840   :  { %v2310_v56 = vpop.f32.mrb[5].mxu1  ;;  %2318 = vmatprep.mubr.msk.f32.mxu1 %vm197_vm2, %v785_v55 }
 0x841   :  { %2319 = vmatmul.mubr.msk.f32.vlgmr.msra.gmra.mrb[6].mxu1 %vm197_vm2, %v861_v26 }
 0x842   :  { %2323 = vmatprep.mubr.msk.f32.mxu1 %vm197_vm2, %v2779_v58 }
 0x89c   :  { %v1209_v59 = vpop.xlane.xlu1 %1208 }
 0x89d   :  { %2510 = vrcp.f32 %v1209_v59 }
 0x8a0   :  { %v1212_v60 = vpop.xlane.xlu1 %1211 }
 0x8a1   :  { %2512 = vrcp.f32 %v1212_v60 }
 0x8a4   :  { %v952_v62 = vpop.permute.xlu1 %951 }
 0x8a5   :  { %2321 = vmatprep.subr.mxu1 %v952_v62 }
 0x8a6   :  { %2322 = vmatpush3.msra.mxu1 %v952_v62 }
 0x8a7   :  { %v2511_v51 = vpop.eup %2510  ;;  %2324 = vmatmul.mubr.msk.f32.vlgmr.msra.gmra.mrb[6].mxu1 %vm197_vm2, %v2761_v42  ;;  %2336 = vmatprep.subr.mxu1 %v2558_v13  ;;  %v1457_v42 = vpop.permute.xlu0 %1456 }
 0x8a8   :  { %v1215_v61 = vmul.f32 %v2511_v51, %v2507_v50  ;;  %2337 = vmatpush3.msra.mxu1 %v1218_v21  ;;  %2338 = vmatprep.mubr.msk.f32.mxu1 %vm2562_vm1, %v2558_v13  ;;  %v1537_v5 = vpop.permute.xlu1 %1536 }
 0x8a9   :  { %2346 = vmatprep.subr.mxu1 %v1371_v63 }
 0x8ab   :  { %v2513_v58 = vpop.eup %2512  ;;  %2339 = vmatmul.mubr.msk.f32.vlgmr.msra.gmra.mrb[8].mxu1 %vm197_vm2, %v1215_v61 }
 0x8ac   :  { %v1216_v3 = vmul.f32 %v2513_v58, %v2509_v53  ;;  %2347 = vmatpush3.msra.mxu1 %v1371_v63  ;;  %v1535_v15 = vpop.permute.xlu1 %1534 }
 0x8ad   :  { %2356 = vmatprep.subr.mxu1 %v2558_v13 }
 0x8ae   :  { %2344 = vmatmul.mubr.msk.f32.vlgmr.msra.gmra.mrb[18].mxu0 %vm197_vm2, %v1216_v3 }
 0x8af   :  { %2352 = vmatpush3.xpose.msk.msra.mxu0 %vm197_vm2, %v1459_v2  ;;  %2353 = vmatprep.mubr.msk.f32.mxu0 %vm2562_vm1, %v2558_v13 }
 0x8b0   :  { %2361 = vmatprep.subr.mxu0 %v2558_v13 }
 0x8b2   :  { %2354 = vmatmul.mubr.msk.f32.vlgmr.msra.gmra.mrb[20].mxu0 %vm197_vm2, %v1457_v42 }
 0x8b3   :  { %2363 = vmatprep.mubr.msk.f32.mxu0 %vm2562_vm1, %v2558_v13 }
 0x97e   :  { %v1289_v4 = vpop.f32.mrb[8].mxu1 }
 0x97f   :  { %v2340_v8 = vpop.f32.mrb[9].mxu1  ;;  %2348 = vmatprep.mubr.msk.f32.mxu1 %vm197_vm2, %v1289_v4 }
 0x981   :  { %v1365_v9 = vpop.f32.mrb[18].mxu0 }
 0x982   :  { %v2345_v14 = vpop.f32.mrb[19].mxu0  ;;  %2349 = vmatmul.mubr.msk.f32.vlgmr.msra.gmra.mrb[6].mxu1 %vm197_vm2, %v1365_v9 }
 0x983   :  { %2357 = vmatpush3.xpose.msk.msra.mxu1 %vm197_vm2, %v1537_v5  ;;  %2358 = vmatprep.mubr.msk.f32.mxu1 %vm2562_vm1, %v2558_v13 }
 0x984   :  { %2366 = vmatprep.subr.mxu1 %v2558_v13 }
 0x985   :  { %v1530_v48 = vpop.f32.mrb[20].mxu0 }
 0x986   :  { %v1612_v57 = vmul.f32 0.35355338, %v1530_v48  ;;  %v2355_v16 = vpop.f32.mrb[21].mxu0  ;;  %2359 = vmatmul.mubr.msk.f32.vlgmr.msra.gmra.mrb[10].mxu1 %vm197_vm2, %v1535_v15 }
 0x987   :  { %2368 = vmatprep.mubr.msk.f32.mxu1 %vm2562_vm1, %v2558_v13 }
 0x988   :  { %v1614_v17 = vsel %vm2728_vm3, %v1612_v57, -1e+30 }
 0x989   :  { %v1616_v18 = vsel %vm197_vm2, %v1614_v17, -inf }
 0x98a   :  { %1617 = vmax.xlane.f32.xlu0 %v1616_v18 }
 0xa17   :  { %v1618_v19 = vpop.xlane.xlu0 %1617 }
 0xa18   :  { %v1622_v20 = vsub.f32 %v1614_v17, %v1618_v19 }
 0xa1a   :  { %v1624_v21 = vmul.f32 1.442695, %v1622_v20 }
 0xa1c   :  { %2514 = vpow2.f32 %v1624_v21 }
 0xa26   :  { %v2515_v22 = vpop.eup %2514 }
 0xa27   :  { %v1628_v23 = vsel %vm197_vm2, %v2515_v22, 0.0 }
 0xa28   :  { %1629 = vadd.xlane.f32.xlu0 %v1628_v23 }
 0xa59   :  { %v1608_v24 = vpop.f32.mrb[10].mxu1 }
 0xa5a   :  { %v1613_v25 = vmul.f32 0.35355338, %v1608_v24  ;;  %v2360_v26 = vpop.f32.mrb[11].mxu1 }
 0xa5c   :  { %v1615_v27 = vsel %vm2728_vm3, %v1613_v25, -1e+30 }
 0xa5d   :  { %v1619_v28 = vsel %vm197_vm2, %v1615_v27, -inf }
 0xa5e   :  { %1620 = vmax.xlane.f32.xlu1 %v1619_v28  ;;  %v2211_v28 = vld [vmem:[%s2975_s2 + $0x1] ss:$0 sm:$0xff] }
 0xa6f   :  { %1638 = vrot.lane.b32.xlu1 %v2683_v37, %s2571_s27 }
 0xa73   :  { %1791 = vrot.lane.b32.xlu1 %v2647_v12, %s2559_s14 }
 0xa77   :  { %2472 = vrot.lane.b32.xlu1 %v2471_v47, %s2561_s18  ;;  %v2072_v47 = vld [vmem:[%s2977_s4 + $0x50] sm:$0xff] }
 0xab5   :  { %v1630_v29 = vpop.xlane.xlu0 %1629 }
 0xab6   :  { %2516 = vrcp.f32 %v1630_v29 }
 0xac0   :  { %v2517_v31 = vpop.eup %2516 }
 0xac1   :  { %v1636_v34 = vmul.f32 %v2517_v31, %v2515_v22 }
 0xaeb   :  { %v1621_v30 = vpop.xlane.xlu1 %1620 }
 0xaec   :  { %v1623_v32 = vsub.f32 %v1615_v27, %v1621_v30 }
 0xaee   :  { %v1626_v33 = vmul.f32 1.442695, %v1623_v32 }
 0xaef   :  { %v1639_v35 = vpop.permute.xlu1 %1638 }
 0xaf0   :  { %2518 = vpow2.f32 %v1626_v33  ;;  %2362 = vmatpush3.msra.mxu0 %v1639_v35  ;;  %v2062_v33 = vld [vmem:[%s2977_s4] sm:$0xff]  ;;  %v2064_v35 = vld [vmem:[%s2977_s4 + $0x10] sm:$0xff] }
 0xaf1   :  { %2364 = vmatmul.mubr.msk.f32.vlgmr.msra.gmra.mrb[22].mxu0 %vm197_vm2, %v1636_v34  ;;  %v2063_v34 = vld [vmem:[%s2977_s4 + $0x8] sm:$0xff] }
 0xaf2   :  { %2017 = vmatprep.mubr.f32.mxu0 %v2558_v13 }
 0xaf3   :  { %v1792_v38 = vpop.permute.xlu1 %1791 }
 0xaf7   :  { %v2473_v53 = vpop.permute.xlu1 %2472 }
 0xaf8   :  { %v2475_v55 = vunpack.i.h.bf16 %v2473_v53  ;;  %v2474_v56 = vunpack.i.l.bf16 %v2473_v53 }
 0xafa   :  { %v2519_v10 = vpop.eup %2518  ;;  %v1936_v62 = vsel %vm1934_vm4, %v2474_v56, %v2475_v55 }
 0xafb   :  { %v1631_v37 = vsel %vm197_vm2, %v2519_v10, 0.0 }
 0xafc   :  { %1632 = vadd.xlane.f32.xlu0 %v1631_v37 }
 0xb12   :  { %1714 = vrot.lane.b32.xlu0 %v2688_v41, %s2571_s27  ;;  %v1903_v41 = vld [vmem:[%s2976_s3 + $0x10] sm:$0xff] }
 0xb13   :  { %v2466_v49 = vpack.i.bf16 %v1903_v41, %v2624_v6 }
 0xb16   :  { %2467 = vrot.lane.b32.xlu0 %v2466_v49, %s2561_s18  ;;  %v2073_v49 = vld [vmem:[%s2977_s4 + $0x58] sm:$0xff] }
 0xb89   :  { %v1633_v36 = vpop.xlane.xlu0 %1632 }
 0xb8a   :  { %2520 = vrcp.f32 %v1633_v36  ;;  %v2066_v36 = vld [vmem:[%s2977_s4 + $0x20] sm:$0xff] }
 0xb8d   :  { %v1715_v39 = vpop.permute.xlu0 %1714 }
 0xb8e   :  { %2367 = vmatpush3.msra.mxu1 %v1715_v39 }
 0xb8f   :  { %2371 = vmatprep.subr.mxu1 %v1792_v38 }
 0xb91   :  { %v2468_v54 = vpop.permute.xlu0 %2467 }
 0xb92   :  { %v2470_v59 = vunpack.i.h.bf16 %v2468_v54  ;;  %v2469_v60 = vunpack.i.l.bf16 %v2468_v54 }
 0xb94   :  { %v2521_v40 = vpop.eup %2520  ;;  %v2411_v7 = vpack.c.bf16 %v2475_v55, %v2470_v59  ;;  %v1935_v6 = vsel %vm1934_vm4, %v2469_v60, %v2470_v59 }
 0xb95   :  { %v1637_v43 = vmul.f32 %v2521_v40, %v2519_v10  ;;  %v2413_v63 = vpack.c.bf16 %v1936_v62, %v1935_v6  ;;  %v2419_v10 = vpack.c.bf16 %v2063_v34, %v2062_v33  ;;  %v2068_v40 = vld [vmem:[%s2977_s4 + $0x30] sm:$0xff] }
 0xb96   :  { %2412 = vmatprep.subr.bf16.mxu0 %v2411_v7 }
 0xb97   :  { %2369 = vmatmul.mubr.msk.f32.vlgmr.msra.gmra.mrb[12].mxu1 %vm197_vm2, %v1637_v43  ;;  %2414 = vmatpush1.bf16.msra.mxu0 %v2413_v63  ;;  %v2069_v43 = vld [vmem:[%s2977_s4 + $0x38] sm:$0xff] }
 0xb98   :  { %2372 = vmatpush3.msra.mxu1 %v1792_v38  ;;  %v2067_v38 = vld [vmem:[%s2977_s4 + $0x28] sm:$0xff] }
 0xb99   :  { %2420 = vmatprep.subr.bf16.mxu1 %v2419_v10  ;;  %v2427_v39 = vpack.c.bf16 %v2067_v38, %v2066_v36 }
 0xbc4   :  { %v1710_v44 = vpop.f32.mrb[22].mxu0 }
 0xbc5   :  { %v2365_v45 = vpop.f32.mrb[23].mxu0  ;;  %2373 = vmatprep.mubr.msk.f32.mxu1 %vm197_vm2, %v1710_v44  ;;  %v2431_v44 = vpack.c.bf16 %v2069_v43, %v2068_v40 }
 0xbc6   :  { %v2070_v45 = vld [vmem:[%s2977_s4 + $0x40] sm:$0xff] }
 0xbc7   :  { %v2435_v41 = vpack.c.bf16 %v2071_v46, %v2070_v45 }
 0xc6a   :  { %v1786_v50 = vpop.f32.mrb[12].mxu1 }
 0xc6b   :  { %v2370_v52 = vpop.f32.mrb[13].mxu1  ;;  %2374 = vmatmul.mubr.msk.f32.vlgmr.msra.gmra.mrb[6].mxu1 %vm197_vm2, %v1786_v50  ;;  %v2439_v50 = vpack.c.bf16 %v2073_v49, %v2072_v47 }
 0xc6c   :  { %2422 = vmatpush3.bf16.msra.mxu1 %v2419_v10 }
 0xd3e   :  { %v2375_v51 = vpop.f32.mrb[6].mxu1 }
 0xd3f   :  { %v2884_v61 = vadd.f32 %v2375_v51, %v2613_v1  ;;  %v1866_v58 = vpop.f32.mrb[7].mxu1  ;;  %v1907_v1 = vld [vmem:[%s2976_s3 + $0x40] sm:$0xff] }
 0xd40   :  { %v2887_v2 = vadd.f32 %v1866_v58, %v2608_v0  ;;  %v2476_v8 = vpack.i.bf16 %v1907_v1, %v2642_v11  ;;  %v1909_v0 = vld [vmem:[%s2976_s3 + $0x58] sm:$0xff] }
 0xd41   :  { %v1880_v3 = vmul.f32 %v2884_v61, %v2884_v61  ;;  %v2481_v9 = vpack.i.bf16 %v1909_v0, %v2647_v12 }
 0xd42   :  { %v1879_v42 = vmul.f32 %v2887_v2, %v2887_v2 }
 0xd43   :  { %v1884_v4 = vsel %vm25_vm0, %v1880_v3, 0.0 }
 0xd44   :  { %1885 = vadd.xlane.f32.xlu0 %v1884_v4  ;;  %v1881_v5 = vsel %vm25_vm0, %v1879_v42, 0.0 }
 0xd45   :  { %1882 = vadd.xlane.f32.xlu1 %v1881_v5 }
 0xd56   :  { %2477 = vrot.lane.b32.xlu1 %v2476_v8, %s2561_s18 }
 0xd5a   :  { %2482 = vrot.lane.b32.xlu0 %v2481_v9, %s2561_s18 }
 0xdd1   :  { %v1886_v14 = vpop.xlane.xlu0 %1885 }
 0xdd2   :  { %v1888_v15 = vmul.f32 0.03125, %v1886_v14  ;;  %v1883_v48 = vpop.xlane.xlu1 %1882 }
 0xdd3   :  { %v1887_v57 = vmul.f32 0.03125, %v1883_v48 }
 0xdd4   :  { %v1890_v16 = vadd.f32 1e-05, %v1888_v15 }
 0xdd5   :  { %v1889_v17 = vadd.f32 1e-05, %v1887_v57  ;;  %v2483_v18 = vpop.permute.xlu0 %2482 }
 0xdd6   :  { %2522 = vrsqrt.f32 %v1890_v16  ;;  %v2485_v19 = vunpack.i.h.bf16 %v2483_v18  ;;  %v2484_v11 = vunpack.i.l.bf16 %v2483_v18  ;;  %v2478_v20 = vpop.permute.xlu1 %2477 }
 0xdd7   :  { %2524 = vrsqrt.f32 %v1889_v17  ;;  %v2480_v21 = vunpack.i.h.bf16 %v2478_v20  ;;  %v2479_v22 = vunpack.i.l.bf16 %v2478_v20 }
 0xdd8   :  { %v1938_v12 = vsel %vm1934_vm4, %v2484_v11, %v2485_v19 }
 0xdd9   :  { %v2415_v23 = vpack.c.bf16 %v2485_v19, %v2480_v21  ;;  %v1937_v24 = vsel %vm1934_vm4, %v2479_v22, %v2480_v21 }
 0xdda   :  { %v2417_v25 = vpack.c.bf16 %v1938_v12, %v1937_v24 }
 0xddb   :  { %2416 = vmatprep.subr.bf16.mxu0 %v2415_v23 }
 0xddc   :  { %2418 = vmatpush1.bf16.msra.mxu0 %v2417_v25 }
 0xde0   :  { %v2523_v26 = vpop.eup %2522 }
 0xde1   :  { %v2525_v27 = vpop.eup %2524  ;;  %v1894_v31 = vmul.f32 %v2523_v26, %v2884_v61 }
 0xde2   :  { %v1893_v29 = vmul.f32 %v2525_v27, %v2887_v2 }
 0xde3   :  { %v1901_v32 = vmul.f32 %v2211_v28, %v1894_v31 }
 0xde4   :  { %v1900_v30 = vmul.f32 %v2211_v28, %v1893_v29 }
 0xde6   :  { %2212 = vmatmul.mubr.msk.f32.vlgmr.msra.gmra.mrb[24].mxu0 %vm25_vm0, %v1900_v30 }
 0xde7   :  { %2023 = vmatprep.mubr.f32.mxu0 %v2558_v13  ;;  %v2065_v13 = vld [vmem:[%s2977_s4 + $0x18] sm:$0xff]  ;;  %s2572_s4 = smov [#allocation2]  }
 0xde8   :  { %v2423_v37 = vpack.c.bf16 %v2065_v13, %v2064_v35 }
 0xdea   :  { %2213 = vmatmul.mubr.msk.f32.gmra.mrb[26].mxu0 %vm25_vm0, %v1901_v32  ;;  %2424 = vmatprep.subr.bf16.mxu1 %v2423_v37 }
 0xdeb   :  { %2426 = vmatpush3.bf16.msra.mxu1 %v2423_v37 }
 0xdec   :  { %2428 = vmatprep.subr.bf16.mxu1 %v2427_v39 }
 0xdef   :  { %2430 = vmatpush3.bf16.msra.mxu1 %v2427_v39 }
 0xdf0   :  { %2432 = vmatprep.subr.bf16.mxu1 %v2431_v44 }
 0xdf3   :  { %2434 = vmatpush3.bf16.msra.mxu1 %v2431_v44 }
 0xdf4   :  { %2436 = vmatprep.subr.bf16.mxu1 %v2435_v41 }
 0xdf7   :  { %2438 = vmatpush3.bf16.msra.mxu1 %v2435_v41 }
 0xdf8   :  { %2440 = vmatprep.subr.bf16.mxu1 %v2439_v50 }
 0xdfb   :  { %2442 = vmatpush3.bf16.msra.mxu1 %v2439_v50 }
 0xeb9   :  { %v2019_v52 = vpop.f32.mrb[24].mxu0 }
 0xeba   :  { %2048 = vrot.lane.b32.xlu1 %v2019_v52, %s2560_s17  ;;  %v2021_v53 = vpop.f32.mrb[25].mxu0  ;;  %v2214_v56 = vmul.f32 -1.442695, %v2019_v52 }
 0xebb   :  { %2050 = vrot.lane.b32.xlu0 %v2021_v53, %s2560_s17 }
 0xebc   :  { %2526 = vpow2.f32 %v2214_v56 }
 0xebd   :  { %v2025_v54 = vpop.f32.mrb[26].mxu0 }
 0xebe   :  { %2052 = vrot.lane.b32.xlu1 %v2025_v54, %s2560_s17  ;;  %v2027_v55 = vpop.f32.mrb[27].mxu0  ;;  %v2215_v59 = vmul.f32 -1.442695, %v2025_v54 }
 0xebf   :  { %2054 = vrot.lane.b32.xlu0 %v2027_v55, %s2560_s17  ;;  %s2165_s17 = sshll.u32 %s2572_s4, 4  ;;  %s2166_s17 = int_to_ptr.vmem [resolvable:$true] %s2165_s17 }
 0xec0   :  { %2528 = vpow2.f32 %v2215_v59  ;;  %s2534_s9 = scalar_lea.vmem %s2166_s17, 256  ;;  %p2539_p1 = scmp.lt.s32.totalorder %s2166_s17, %s2166_s17 }
 0xec1   :  { %p2535_p0 = scmp.ne.s32.totalorder %s2166_s17, %s2534_s9  ;;  %p2540_p2 = scmp.lt.s32.totalorder %s2534_s9, %s2534_s9 }
 0xec3   :  { %p2541_p3 = por %p2540_p2, %p2539_p1 }
 0xec5   :  { %p2542_p4 = pnand %p2541_p3, %p2535_p0 }
 0xec6   :  { %v2527_v60 = vpop.eup %2526 }
 0xec7   :  { %v2036_v62 = vadd.f32 1.0, %v2527_v60 }
 0xec9   :  { %2530 = vrcp.f32 %v2036_v62 }
 0xeca   :  { %v2529_v7 = vpop.eup %2528 }
 0xecb   :  { %v2037_v6 = vadd.f32 1.0, %v2529_v7 }
 0xecd   :  { %2532 = vrcp.f32 %v2037_v6 }
 0xed3   :  { %v2531_v63 = vpop.eup %2530 }
 0xed4   :  { %v2042_v58 = vmul.f32 %v2531_v63, %v2019_v52 }
 0xed7   :  { %v2533_v42 = vpop.eup %2532 }
 0xed8   :  { %v2043_v8 = vmul.f32 %v2533_v42, %v2025_v54 }
 0xf2c   :  { %v2049_v51 = vpop.permute.xlu1 %2048 }
 0xf2d   :  { %v2051_v3 = vpop.permute.xlu0 %2050 }
 0xf2e   :  { %v2056_v4 = vsel %vm25_vm0, %v2049_v51, %v2051_v3 }
 0xf2f   :  { %v2060_v5 = vmul.f32 %v2056_v4, %v2042_v58 }
 0xf30   :  { %v2053_v1 = vpop.permute.xlu1 %2052 }
 0xf31   :  { %2400 = vmatprep.mubr.msk.f32.mxu1 %vm2074_vm5, %v2060_v5  ;;  %v2055_v0 = vpop.permute.xlu0 %2054 }
 0xf32   :  { %v2057_v9 = vsel %vm25_vm0, %v2053_v1, %v2055_v0 }
 0xf33   :  { %v2061_v14 = vmul.f32 %v2057_v9, %v2043_v8 }
 0xf35   :  { %2401 = vmatmul.mubr.msk.f32.vlgmr.msra.gmra.mrb[14].mxu1 %vm2074_vm5, %v2061_v14 }
0x1008   :  { %v2402_v15 = vpop.f32.mrb[14].mxu1 }
0x1009   :  { %v2157_v48 = vadd.f32 %v2402_v15, %v2884_v61  ;;  %v2147_v57 = vpop.f32.mrb[15].mxu1 }
0x100a   :  { %v2156_v16 = vadd.f32 %v2147_v57, %v2887_v2 }
0x100b   :  { %2159 = vst.msk [vmem:[#allocation2 + $0x8] sm:$0xff] %vm25_vm0, %v2157_v48 }
0x100c   :  { %2158 = vst.msk [vmem:[#allocation2] sm:$0xff] %vm25_vm0, %v2156_v16 }
0x100d   :  { %2545 = shalt.err (!%p2542_p4)
}
0x100e   :  { %s2546_s11 = scalar_lea.hbm %s2978_s5, 256 }
0x100f   :  { %p2547_p5 = scmp.ne.s32.totalorder %s2978_s5, %s2546_s11  ;;  %p2550_p6 = scmp.lt.u32.totalorder %s2546_s11, %s2978_s5 }
0x1011   :  { %p2552_p7 = pnand %p2550_p6, %p2547_p5 }
0x1013   :  { %2555 = shalt.err (!%p2552_p7)
}
0x1014   :  { %s2573_s2 = smov 128   ;;  %s2574_s16 = smov 8  }
0x1015   :  { %2171 = dma.vmem_to_hbm [thread:$0]  %s2166_s17, 256, %s2978_s5, [#allocation3], %s2573_s2, %s2573_s2, %s2574_s16  }
0x1016   :  { %2556 = dma.done.wait [#allocation3], 256  }
0x1017   :  { %2557 = vsyncadd [#allocation3], 4294967040 }
0x1018   :  { %2175 = vsyncpa [#allocation3], 1 }

</bundles_post_ra>
